<compile_context>
chip_gen: v7x
topology: tpu7x:2x2x1
jax: 0.10.0
libtpu: 0.0.40
codegen_flags: <defaults>
</compile_context>

<pallas_src>
import jax
import jax.numpy as jnp
from jax.experimental import pallas as pl
from jax.experimental.pallas import tpu as pltpu

EPS = 1e-5  # PyTorch BatchNorm1d default eps


def _round_up(n, m):
    return ((n + m - 1) // m) * m


def mlp_kernel(x_ref, w1_ref, b1_ref, w2_ref, b2_ref, out_ref):
    # x tile: (TB, D_in) f32; weights pre-folded (BN absorbed) and in bf16.
    x = x_ref[...]

    # First matmul on the MXU (bf16 operands, f32 accumulation) + f32 bias/ReLU.
    h = jnp.dot(x.astype(jnp.bfloat16), w1_ref[...],
                preferred_element_type=jnp.float32) + b1_ref[...]
    h = jnp.maximum(h, 0.0)

    # Second (lane-dense, padded-N) matmul + f32 bias.
    logit = jnp.dot(h.astype(jnp.bfloat16), w2_ref[...],
                    preferred_element_type=jnp.float32) + b2_ref[...]
    out_ref[...] = logit.astype(out_ref.dtype)


def model_forward(x, params, *, tile_b=256):
    """x: (B, input_dim) float32.  params: dict of model parameters (f32)."""
    B, D_in = x.shape
    H = params["w1"].shape[1]
    D_out = params["w2"].shape[1]

    # ---- Fold eval-mode BatchNorms into the linear layers (done once, outside
    #      the kernel, in f32). ----
    # input_norm: y = (x - mean) * gamma/sqrt(var+eps) + beta = x*s_in + t_in
    s_in = params["in_gamma"] * jax.lax.rsqrt(params["in_var"] + EPS)
    t_in = params["in_beta"] - params["in_mean"] * s_in
    # (x*s_in + t_in) @ W1 + b1  ==  x @ (s_in[:,None]*W1) + (t_in @ W1 + b1)
    w1f = s_in[:, None] * params["w1"]
    b1f = t_in @ params["w1"] + params["b1"]

    # norm1 sits AFTER the ReLU, so its affine folds into W2/b2 (valid across
    # the nonlinearity because it is applied to the ReLU *output*):
    # ((r*s1 + t1) @ W2 + b2) == r @ (s1[:,None]*W2) + (t1 @ W2 + b2)
    s1 = params["g1"] * jax.lax.rsqrt(params["v1"] + EPS)
    t1 = params["bt1"] - params["m1"] * s1
    w2f = s1[:, None] * params["w2"]
    b2f = t1 @ params["w2"] + params["b2"]

    # ---- Lane-dense output: pad the output width to a multiple of 128. ----
    D_out_p = _round_up(max(D_out, 1), 128)
    if D_out_p != D_out:
        w2f = jnp.pad(w2f, ((0, 0), (0, D_out_p - D_out)))
        b2f = jnp.pad(b2f, ((0, D_out_p - D_out),))

    # bf16 weights: halve VMEM residency, double MXU throughput.
    w1_bf = w1f.astype(jnp.bfloat16)
    w2_bf = w2f.astype(jnp.bfloat16)
    b1_row = b1f.reshape(1, H).astype(jnp.float32)
    b2_row = b2f.reshape(1, D_out_p).astype(jnp.float32)

    # ---- Batch tiling (multiple of 8 sublanes); pad B up to a tile multiple. ----
    TB = min(tile_b, _round_up(B, 8))
    B_p = _round_up(B, TB)
    x_p = jnp.pad(x, ((0, B_p - B), (0, 0))) if B_p != B else x
    grid = (B_p // TB,)

    flops = 2 * B_p * (D_in * H + H * D_out_p)
    bytes_accessed = (x_p.size * 4 + w1_bf.size * 2 + w2_bf.size * 2
                      + b1_row.size * 4 + b2_row.size * 4
                      + B_p * D_out_p * 4)

    out = pl.pallas_call(
        mlp_kernel,
        out_shape=jax.ShapeDtypeStruct((B_p, D_out_p), jnp.float32),
        grid=grid,
        in_specs=[
            pl.BlockSpec((TB, D_in), lambda i: (i, 0)),     # x: tiled over batch
            pl.BlockSpec((D_in, H), lambda i: (0, 0)),      # W1': VMEM-resident
            pl.BlockSpec((1, H), lambda i: (0, 0)),         # b1'
            pl.BlockSpec((H, D_out_p), lambda i: (0, 0)),   # W2' (padded N)
            pl.BlockSpec((1, D_out_p), lambda i: (0, 0)),   # b2' (padded N)
        ],
        out_specs=pl.BlockSpec((TB, D_out_p), lambda i: (i, 0)),
        compiler_params=pltpu.CompilerParams(
            dimension_semantics=("parallel",)),
        cost_estimate=pl.CostEstimate(
            flops=flops, transcendentals=0, bytes_accessed=bytes_accessed),
    )(x_p, w1_bf, b1_row, w2_bf, b2_row)

    return out[:B, :D_out]


def init_params(key, input_dim, hidden_dim, output_dim):
    k1, k2, k3, k4, k5, k6, k7, k8 = jax.random.split(key, 8)
    # nn.Linear stores weight as (out, in); we keep the pre-transposed (in, out).
    w1 = jax.random.normal(k1, (input_dim, hidden_dim), jnp.float32) * 0.1
    b1 = jax.random.normal(k2, (hidden_dim,), jnp.float32) * 0.1
    w2 = jax.random.normal(k3, (hidden_dim, output_dim), jnp.float32) * 0.1
    b2 = jax.random.normal(k4, (output_dim,), jnp.float32) * 0.1
    # BatchNorm affine init gamma=1, beta=0; non-trivial running stats so the
    # normalization (and its folding) actually does something.
    in_gamma = jnp.ones((input_dim,), jnp.float32)
    in_beta = jnp.zeros((input_dim,), jnp.float32)
    in_mean = jax.random.normal(k5, (input_dim,), jnp.float32) * 0.05
    in_var = jnp.abs(jax.random.normal(k6, (input_dim,), jnp.float32)) * 0.1 + 1.0
    g1 = jnp.ones((hidden_dim,), jnp.float32)
    bt1 = jnp.zeros((hidden_dim,), jnp.float32)
    m1 = jax.random.normal(k7, (hidden_dim,), jnp.float32) * 0.05
    v1 = jnp.abs(jax.random.normal(k8, (hidden_dim,), jnp.float32)) * 0.1 + 1.0
    return dict(w1=w1, b1=b1, w2=w2, b2=b2,
                in_gamma=in_gamma, in_beta=in_beta, in_mean=in_mean, in_var=in_var,
                g1=g1, bt1=bt1, m1=m1, v1=v1)


def reference_forward(x, p):
    """Unfolded f32 reference (matches the PyTorch eval-mode forward)."""
    xn = (x - p["in_mean"]) / jnp.sqrt(p["in_var"] + EPS) * p["in_gamma"] + p["in_beta"]
    h = xn @ p["w1"] + p["b1"]
    h = jnp.maximum(h, 0.0)
    h = (h - p["m1"]) / jnp.sqrt(p["v1"] + EPS) * p["g1"] + p["bt1"]
    return h @ p["w2"] + p["b2"]


if __name__ == "__main__":
    input_dim, hidden_dim, output_dim = 32, 64, 4
    batch = 8

    key = jax.random.PRNGKey(0)
    kx, kp = jax.random.split(key)
    x = jax.random.normal(kx, (batch, input_dim), jnp.float32)
    params = init_params(kp, input_dim, hidden_dim, output_dim)

    out = model_forward(x, params)
    out = jax.block_until_ready(out)

    ref = reference_forward(x, params)
    assert out.shape == (batch, output_dim)
    # bf16 MXU operands with f32 accumulation -> relaxed tolerance vs f32 ref.
    assert jnp.allclose(out, ref, atol=2e-2, rtol=2e-2), "mismatch vs reference"

    print("KERNEL_OK")
</pallas_src>

<mosaic_0001>
module attributes {stable_mosaic.version = 11 : i64} {
  func.func @mlp_kernel(%arg0: i32, %arg1: memref<8x32xf32, #tpu.memory_space<vmem>>, %arg2: memref<32x64xbf16, #tpu.memory_space<vmem>>, %arg3: memref<1x64xf32, #tpu.memory_space<vmem>>, %arg4: memref<64x128xbf16, #tpu.memory_space<vmem>>, %arg5: memref<1x128xf32, #tpu.memory_space<vmem>>, %arg6: memref<8x128xf32, #tpu.memory_space<vmem>>) attributes {dimension_semantics = [#tpu.dimension_semantics<parallel>], iteration_bounds = array<i64: 1>, scalar_prefetch = 0 : i64, scratch_operands = 0 : i64, tpu.core_type = #tpu.core_type<tc>, window_params = [{transform_indices = @transform_0, window_bounds = array<i64: 8, 32>}, {pipeline_mode = #tpu.pipeline_mode<synchronous>, transform_indices = @transform_1, window_bounds = array<i64: 32, 64>}, {pipeline_mode = #tpu.pipeline_mode<synchronous>, transform_indices = @transform_2, window_bounds = array<i64: 1, 64>}, {pipeline_mode = #tpu.pipeline_mode<synchronous>, transform_indices = @transform_3, window_bounds = array<i64: 64, 128>}, {pipeline_mode = #tpu.pipeline_mode<synchronous>, transform_indices = @transform_4, window_bounds = array<i64: 1, 128>}, {transform_indices = @transform_5, window_bounds = array<i64: 8, 128>}]} {
    %c0 = arith.constant 0 : index
    %c0_0 = arith.constant 0 : index
    %0 = vector.load %arg1[%c0, %c0_0] : memref<8x32xf32, #tpu.memory_space<vmem>>, vector<8x32xf32>
    %1 = arith.truncf %0 : vector<8x32xf32> to vector<8x32xbf16>
    %c0_1 = arith.constant 0 : index
    %c0_2 = arith.constant 0 : index
    %2 = vector.load %arg2[%c0_1, %c0_2] : memref<32x64xbf16, #tpu.memory_space<vmem>>, vector<32x64xbf16>
    %cst = arith.constant dense<0.000000e+00> : vector<8x64xf32>
    %3 = tpu.matmul %1, %2, %cst {dimension_numbers = #tpu.dot_dimension_numbers<[1], [0], [0], [1], [0, 0, 1, 1], [], []>} : vector<8x32xbf16>, vector<32x64xbf16>, vector<8x64xf32> -> vector<8x64xf32>
    %c0_3 = arith.constant 0 : index
    %c0_4 = arith.constant 0 : index
    %4 = vector.load %arg3[%c0_3, %c0_4] : memref<1x64xf32, #tpu.memory_space<vmem>>, vector<1x64xf32>
    %5 = vector.broadcast %4 : vector<1x64xf32> to vector<8x64xf32>
    %6 = arith.addf %3, %5 : vector<8x64xf32>
    %cst_5 = arith.constant 0.000000e+00 : f32
    %7 = vector.broadcast %cst_5 : f32 to vector<8x64xf32>
    %8 = arith.maximumf %6, %7 : vector<8x64xf32>
    %9 = arith.truncf %8 : vector<8x64xf32> to vector<8x64xbf16>
    %c0_6 = arith.constant 0 : index
    %c0_7 = arith.constant 0 : index
    %10 = vector.load %arg4[%c0_6, %c0_7] : memref<64x128xbf16, #tpu.memory_space<vmem>>, vector<64x128xbf16>
    %cst_8 = arith.constant dense<0.000000e+00> : vector<8x128xf32>
    %11 = tpu.matmul %9, %10, %cst_8 {dimension_numbers = #tpu.dot_dimension_numbers<[1], [0], [0], [1], [0, 0, 1, 1], [], []>} : vector<8x64xbf16>, vector<64x128xbf16>, vector<8x128xf32> -> vector<8x128xf32>
    %c0_9 = arith.constant 0 : index
    %c0_10 = arith.constant 0 : index
    %12 = vector.load %arg5[%c0_9, %c0_10] : memref<1x128xf32, #tpu.memory_space<vmem>>, vector<1x128xf32>
    %13 = vector.broadcast %12 : vector<1x128xf32> to vector<8x128xf32>
    %14 = arith.addf %11, %13 : vector<8x128xf32>
    %c0_11 = arith.constant 0 : index
    %c0_12 = arith.constant 0 : index
    %15 = vector.load %arg6[%c0_11, %c0_12] : memref<8x128xf32, #tpu.memory_space<vmem>>, vector<8x128xf32>
    tpu.vector_store %arg6[%c0_11, %c0_12], %14 {strides = array<i32>} : memref<8x128xf32, #tpu.memory_space<vmem>>, vector<8x128xf32>,
    return
  }
  func.func @transform_0(%arg0: i32) -> (i32, i32) {
    %c0_i32 = arith.constant 0 : i32
    %c0_i32_0 = arith.constant 0 : i32
    return %arg0, %c0_i32 : i32, i32
  }
  func.func @transform_1(%arg0: i32) -> (i32, i32) {
    %c0_i32 = arith.constant 0 : i32
    %c0_i32_0 = arith.constant 0 : i32
    %c0_i32_1 = arith.constant 0 : i32
    return %c0_i32, %c0_i32_0 : i32, i32
  }
  func.func @transform_2(%arg0: i32) -> (i32, i32) {
    %c0_i32 = arith.constant 0 : i32
    %c0_i32_0 = arith.constant 0 : i32
    %c0_i32_1 = arith.constant 0 : i32
    return %c0_i32, %c0_i32_0 : i32, i32
  }
  func.func @transform_3(%arg0: i32) -> (i32, i32) {
    %c0_i32 = arith.constant 0 : i32
    %c0_i32_0 = arith.constant 0 : i32
    %c0_i32_1 = arith.constant 0 : i32
    return %c0_i32, %c0_i32_0 : i32, i32
  }
  func.func @transform_4(%arg0: i32) -> (i32, i32) {
    %c0_i32 = arith.constant 0 : i32
    %c0_i32_0 = arith.constant 0 : i32
    %c0_i32_1 = arith.constant 0 : i32
    return %c0_i32, %c0_i32_0 : i32, i32
  }
  func.func @transform_5(%arg0: i32) -> (i32, i32) {
    %c0_i32 = arith.constant 0 : i32
    %c0_i32_0 = arith.constant 0 : i32
    return %arg0, %c0_i32 : i32, i32
  }
}

</mosaic_0001>

<bundles_post_ra>
// kernel: tpu_custom_call.1
= control target key start
LH: loop header
LB: loop body
LE: loop exit
PB: predicated region body
PF: predicated region fallthrough
CT: control target
= control target key end

     0   :  { %10 = vsyncpa [#allocation3], 0  ;;  %s476_s0 = inlined_call_operand.hbm [shape: f32[8,32], index: 0, kind: input, shape index: {}]   ;;  %s477_s1 = inlined_call_operand.hbm [shape: bf16[32,64], index: 1, kind: input, shape index: {}]   ;;  %s478_s2 = inlined_call_operand.vmem [shape: f32[1,64], index: 2, kind: input, shape index: {}]   ;;  %s479_s3 = inlined_call_operand.hbm [shape: bf16[64,128], index: 3, kind: input, shape index: {}]   ;;  %s480_s4 = inlined_call_operand.vmem [shape: f32[1,128], index: 4, kind: input, shape index: {}]   ;;  %s481_s5 = inlined_call_operand.hbm [shape: f32[8,128], index: 5, kind: output, shape index: {}]  }
   0x1   :  { %11 = vsyncpa [#allocation6], 0 }
   0x2   :  { %12 = vsyncpa [#allocation4], 0  ;;  %s378_s18 = smov [#allocation5]   ;;  %s284_s22 = scalar_lea.hbm %s477_s1, 256 }
   0x3   :  { %s28_s19 = sshll.u32 %s378_s18, 4  ;;  %p285_p0 = scmp.ne.s32.totalorder %s477_s1, %s284_s22  ;;  %s29_s19 = int_to_ptr.vmem [resolvable:$true] %s28_s19 }
   0x4   :  { %p288_p1 = scmp.lt.u32.totalorder %s284_s22, %s477_s1 }
   0x6   :  { %p290_p2 = pnand %p288_p1, %p285_p0 }
   0x8   :  { %293 = shalt.err (!%p290_p2)
}
   0x9   :  { %s294_s27 = scalar_lea.vmem %s29_s19, 256  ;;  %p299_p4 = scmp.lt.s32.totalorder %s29_s19, %s29_s19 }
   0xa   :  { %p295_p3 = scmp.ne.s32.totalorder %s29_s19, %s294_s27  ;;  %p300_p5 = scmp.lt.s32.totalorder %s294_s27, %s294_s27 }
   0xc   :  { %p301_p6 = por %p300_p5, %p299_p4 }
   0xe   :  { %p302_p7 = pnand %p301_p6, %p295_p3 }
  0x10   :  { %305 = shalt.err (!%p302_p7)
}
  0x11   :  { %s379_s28 = smov 64   ;;  %s380_s29 = smov 4  }
  0x12   :  { %34 = dma.hbm_to_vmem [thread:$0]  %s477_s1, 256, %s29_s19, [#allocation6], %s379_s28, %s379_s28, %s380_s29  }
  0x13   :  { %s381_s7 = smov [#allocation2]   ;;  %s382_s9 = smov [#allocation7]  }
  0x14   :  { %s19_s8 = sshll.u32 %s381_s7, 4  ;;  %s42_s10 = sshll.u32 %s382_s9, 4  ;;  %s20_s8 = int_to_ptr.vmem [resolvable:$true] %s19_s8  ;;  %s43_s10 = int_to_ptr.vmem [resolvable:$true] %s42_s10 }
  0x15   :  { %s306_s13 = scalar_lea.hbm %s476_s0, 128 }
  0x16   :  { %p307_p8 = scmp.ne.s32.totalorder %s476_s0, %s306_s13  ;;  %p310_p9 = scmp.lt.u32.totalorder %s306_s13, %s476_s0 }
  0x18   :  { %p312_p10 = pnand %p310_p9, %p307_p8 }
  0x1a   :  { %315 = shalt.err (!%p312_p10)
}
  0x1b   :  { %s316_s1 = scalar_lea.vmem %s20_s8, 128  ;;  %p321_p12 = scmp.lt.s32.totalorder %s20_s8, %s20_s8 }
  0x1c   :  { %p317_p11 = scmp.ne.s32.totalorder %s20_s8, %s316_s1  ;;  %p322_p13 = scmp.lt.s32.totalorder %s316_s1, %s316_s1 }
  0x1e   :  { %p323_p0 = por %p322_p13, %p321_p12 }
  0x20   :  { %p324_p1 = pnand %p323_p0, %p317_p11 }
  0x22   :  { %327 = shalt.err (!%p324_p1)
}
  0x23   :  { %22 = dma.hbm_to_vmem [thread:$0]  %s476_s0, 128, %s20_s8, [#allocation3]  }
  0x24   :  { %s328_s22 = scalar_lea.hbm %s479_s3, 512 }
  0x25   :  { %p329_p2 = scmp.ne.s32.totalorder %s479_s3, %s328_s22  ;;  %p332_p3 = scmp.lt.u32.totalorder %s328_s22, %s479_s3 }
  0x27   :  { %p334_p4 = pnand %p332_p3, %p329_p2 }
  0x29   :  { %337 = shalt.err (!%p334_p4)
}
  0x2a   :  { %s338_s27 = scalar_lea.vmem %s43_s10, 512  ;;  %p343_p6 = scmp.lt.s32.totalorder %s43_s10, %s43_s10 }
  0x2b   :  { %p339_p5 = scmp.ne.s32.totalorder %s43_s10, %s338_s27  ;;  %p344_p7 = scmp.lt.s32.totalorder %s338_s27, %s338_s27 }
  0x2d   :  { %p345_p8 = por %p344_p7, %p343_p6 }
  0x2f   :  { %p346_p9 = pnand %p345_p8, %p339_p5 }
  0x31   :  { %349 = shalt.err (!%p346_p9)
}
  0x32   :  { %48 = dma.hbm_to_vmem [thread:$0]  %s479_s3, 512, %s43_s10, [#allocation6], %s379_s28, %s379_s28, %s380_s29  }
  0x33   :  { %372 = dma.done.wait [#allocation3], 128  }
  0x34   :  { %373 = vsyncadd [#allocation3], 4294967168 }
  0x35   :  { %374 = dma.done.wait [#allocation6], 768  }
  0x36   :  { %375 = vsyncadd [#allocation6], 4294966528  ;;  %v383_v0 = vmov 0.0   ;;  %vm384_vm0 = vmmov 0   ;;  %v278_v1 = vld [vmem:[#allocation5] sm:$0xff]   ;;  %v279_v2 = vld [vmem:[#allocation5 + $0x8] sm:$0xff]  }
  0x37   :  { %250 = vmatprep.subr.bf16.mxu0 %v383_v0  ;;  %254 = vmatprep.mubr.msk.bf16.mxu0 %vm384_vm0, %v383_v0  ;;  %v61_v3 = vld [vmem:[#allocation2] sm:$0xff]  ;;  %v280_v4 = vld [vmem:[#allocation7] sm:$0xff]   ;;  %vm86_vm1 = vcmask 261120   ;;  %v282_v7 = vld [vmem:[#allocation7 + $0x10] sm:$0xff]   ;;  %vm171_vm2 = vcmask 523264   ;;  %s385_s7 = smov [#allocation8]  }
  0x38   :  { %258 = vmatprep.subr.bf16.mxu1 %v383_v0  ;;  %266 = vmatprep.mubr.msk.bf16.mxu1 %vm384_vm0, %v383_v0  ;;  %v281_v5 = vld [vmem:[#allocation7 + $0x8] sm:$0xff]   ;;  %v62_v6 = vpack.c.bf16 %v61_v3, %v61_v3  ;;  %v283_v8 = vld [vmem:[#allocation7 + $0x18] sm:$0xff]   ;;  %s222_s8 = sshll.u32 %s385_s7, 4  ;;  %s223_s8 = int_to_ptr.vmem [resolvable:$true] %s222_s8 }
  0x39   :  { %251 = vmatpush3.bf16.msra.mxu0 %v278_v1  ;;  %259 = vmatpush3.bf16.msra.mxu1 %v280_v4  ;;  %v232_v9 = vld [vmem:[%s478_s2] ss:$0 sm:$0xff]  ;;  %s350_s2 = scalar_lea.vmem %s223_s8, 128  ;;  %p355_p11 = scmp.lt.s32.totalorder %s223_s8, %s223_s8 }
  0x3a   :  { %252 = vmatprep.subr.bf16.mxu0 %v383_v0  ;;  %260 = vmatprep.subr.bf16.mxu1 %v383_v0  ;;  %v236_v17 = vld [vmem:[%s480_s4] ss:$0 sm:$0xff]  ;;  %p351_p10 = scmp.ne.s32.totalorder %s223_s8, %s350_s2  ;;  %p356_p12 = scmp.lt.s32.totalorder %s350_s2, %s350_s2 }
  0x3c   :  { %p357_p13 = por %p356_p12, %p355_p11 }
  0x3d   :  { %253 = vmatpush3.bf16.msra.mxu0 %v279_v2  ;;  %261 = vmatpush3.bf16.msra.mxu1 %v281_v5 }
  0x3e   :  { %262 = vmatprep.subr.bf16.mxu1 %v383_v0  ;;  %p358_p0 = pnand %p357_p13, %p351_p10 }
  0x40   :  { %255 = vmatmul.mubr.msk.bf16.vlgmr.msra.gmra.mrb[0].mxu0 %vm86_vm1, %v62_v6 }
  0x41   :  { %263 = vmatpush3.bf16.msra.mxu1 %v282_v7 }
  0x42   :  { %264 = vmatprep.subr.bf16.mxu1 %v383_v0 }
  0x45   :  { %265 = vmatpush3.bf16.msra.mxu1 %v283_v8 }
 0x113   :  { %v124_v10 = vpop.f32.mrb[0].mxu0 }
 0x114   :  { %v125_v11 = vadd.f32 %v232_v9, %v124_v10  ;;  %v256_v12 = vpop.f32.mrb[1].mxu0 }
 0x115   :  { %v127_v13 = vpop.f32.mrb[2].mxu0 }
 0x116   :  { %v130_v14 = vmax.f32 %v125_v11, 0.0  ;;  %v257_v15 = vpop.f32.mrb[3].mxu0 }
 0x118   :  { %v131_v16 = vpack.c.bf16 %v130_v14, %v130_v14 }
 0x11a   :  { %267 = vmatmul.mubr.msk.bf16.vlgmr.msra.gmra.mrb[0].mxu1 %vm171_vm2, %v131_v16 }
 0x1ed   :  { %v209_v18 = vpop.f32.mrb[0].mxu1 }
 0x1ee   :  { %v210_v19 = vadd.f32 %v236_v17, %v209_v18  ;;  %v268_v20 = vpop.f32.mrb[1].mxu1 }
 0x1ef   :  { %v212_v21 = vpop.f32.mrb[2].mxu1 }
 0x1f0   :  { %215 = vst [vmem:[#allocation8] sm:$0xff] %v210_v19  ;;  %v269_v22 = vpop.f32.mrb[3].mxu1 }
 0x1f1   :  { %361 = shalt.err (!%p358_p0)
}
 0x1f2   :  { %s362_s4 = scalar_lea.hbm %s481_s5, 128 }
 0x1f3   :  { %p363_p1 = scmp.ne.s32.totalorder %s481_s5, %s362_s4  ;;  %p366_p2 = scmp.lt.u32.totalorder %s362_s4, %s481_s5 }
 0x1f5   :  { %p368_p3 = pnand %p366_p2, %p363_p1 }
 0x1f7   :  { %371 = shalt.err (!%p368_p3)
}
 0x1f8   :  { %225 = dma.vmem_to_hbm [thread:$0]  %s223_s8, 128, %s481_s5, [#allocation4]  }
 0x1f9   :  { %376 = dma.done.wait [#allocation4], 128  }
 0x1fa   :  { %377 = vsyncadd [#allocation4], 4294967168 }
 0x1fb   :  { %229 = vsyncpa [#allocation3], 1 }
 0x1fc   :  { %230 = vsyncpa [#allocation6], 1 }
 0x1fd   :  { %231 = vsyncpa [#allocation4], 1 }

</bundles_post_ra>
